<compile_context>
chip_gen: v7x
topology: tpu7x:2x2x1
jax: 0.10.0
libtpu: 0.0.40
codegen_flags: <defaults>
</compile_context>

<pallas_src>
import functools
import math

import jax
import jax.numpy as jnp
from jax import lax
from jax.experimental import pallas as pl
from jax.experimental.pallas import tpu as pltpu


def _circ_shift(t, s, length):
    """t'[:, i] = t[:, (i - s) % length]  (== jnp.roll(t, s, axis=-1)), static s."""
    if s == 0:
        return t
    return jnp.concatenate([t[:, length - s:], t[:, :length - s]], axis=1)


def _lsh_conv_kernel(rrow_ref, rcol_ref, x_ref, w_ref, b_ref, o_ref, *,
                     L, d_head, K, pad, rank_tk):
    """One (batch, head) tile: sort -> grouped circular conv -> unsort.

    rrow_ref: (1, 1, 1, L)           sort key (ratio), row layout (lanes = seq)
    rcol_ref: (1, 1, L, 1)           sort key (ratio), column layout
    x_ref   : (1, 1, d_head, L)      this head's activations, transposed
    w_ref   : (1, K, d_head, d_head) this head's conv taps W_k[c_out, c_in]
    b_ref   : (1, d_head, 1)         this head's conv bias
    o_ref   : (1, 1, d_head, L)      output, transposed (lane-dense store)
    """
    f32 = jnp.float32
    r_col = rcol_ref[0, 0]                                        # (L, 1)

    # ---- stable argsort ranks via pairwise comparisons ----------------------
    # rank[j] = #{k : r[k] < r[j] or (r[k] == r[j] and k < j)}
    # (position of j in a stable sort; arctan is strictly monotonic so ranks of
    #  the ratio equal ranks of the angle).
    if rank_tk == L:
        r_row = rrow_ref[0, 0]                                    # (1, L)
        j_idx = lax.broadcasted_iota(jnp.int32, (L, L), 0)
        k_idx = lax.broadcasted_iota(jnp.int32, (L, L), 1)
        less = (r_row < r_col) | ((r_row == r_col) & (k_idx < j_idx))
        rank = jnp.sum(less.astype(jnp.int32), axis=1, keepdims=True)
    else:
        n_blk = L // rank_tk
        j_idx = lax.broadcasted_iota(jnp.int32, (L, rank_tk), 0)  # global row j
        k_loc = lax.broadcasted_iota(jnp.int32, (L, rank_tk), 1)  # lane in block

        def rank_step(blk, rank_acc):
            start = pl.multiple_of(blk * rank_tk, rank_tk)
            r_blk = rrow_ref[0, 0, :, pl.ds(start, rank_tk)]      # (1, rank_tk)
            k_idx = k_loc + start
            less = (r_blk < r_col) | ((r_blk == r_col) & (k_idx < j_idx))
            return rank_acc + jnp.sum(less.astype(jnp.int32), axis=1,
                                      keepdims=True)

        rank = lax.fori_loop(0, n_blk, rank_step,
                             jnp.zeros((L, 1), jnp.int32))        # (L, 1)

    # ---- permutation one-hot: Q[j, i] = (rank[j] == i) ----------------------
    lane = lax.broadcasted_iota(jnp.int32, (L, L), 1)             # sorted pos i
    q = (rank == lane).astype(f32)                                # (L, L)

    # ---- gather (sort): sorted^T = x^T @ Q  (lane-dense, MXU) ---------------
    x_t = x_ref[0, 0].astype(f32)                                 # (d_head, L)
    sorted_t = jnp.dot(x_t, q, preferred_element_type=f32)        # (d_head, L)

    # ---- grouped circular conv on the sorted sequence -----------------------
    # conv^T[c, i] = sum_k (W_k @ sorted^T)[c, (i + k - pad) mod L]
    # Each tap's circular shift is a static lane roll of sorted^T (cheap,
    # (d_head, L) tile); K is small & static so the loop is fully unrolled.
    acc = jnp.zeros((d_head, L), f32)
    for k in range(K):
        shifted = _circ_shift(sorted_t, (pad - k) % L, L)         # (d_head, L)
        acc = acc + jnp.dot(w_ref[0, k].astype(f32), shifted,
                            preferred_element_type=f32)

    # ---- scatter back (unsort): out^T[c, j] = conv^T[c, rank[j]] ------------
    # Transposed contraction with Q (no Q^T materialized).
    out = lax.dot_general(acc, q, (((1,), (1,)), ((), ())),
                          preferred_element_type=f32)             # (d_head, L)
    o_ref[0, 0] = (out + b_ref[0].astype(f32)).astype(o_ref.dtype)


def lsh_conv(x, hash_w, hash_b, conv_w, conv_b, *, n_heads,
             kernel_size=3, padding=1, eps=1e-4):
    """x: (B, L, d_model); hash_w: (>=n_heads, 2, d_head); hash_b: (>=n_heads, 2);
    conv_w: (d_model, d_head, K)  [PyTorch grouped-Conv1d layout, groups=n_heads];
    conv_b: (d_model,)."""
    B, L, d_model = x.shape
    H, K, pad = n_heads, kernel_size, padding
    assert d_model % H == 0
    d_head = d_model // H
    assert hash_w.shape[0] >= H and hash_b.shape[0] >= H
    assert conv_w.shape == (d_model, d_head, K) and conv_b.shape == (d_model,)
    assert K == 2 * pad + 1, "circular 'same' conv must preserve the sequence length"
    rank_tk = L if L <= 512 else 512
    assert L % rank_tk == 0

    f32 = jnp.float32
    # Glue: hash projections + sort key.  Tiny O(L*d_model) work, done in XLA
    # because the torch split mixes heads (a per-head block can't see the data
    # it needs).  arctan is strictly monotonic -> sort the ratio directly.
    xh = x.reshape(B, L, H, d_head)
    proj = jnp.einsum("blhd,hod->blho", xh.astype(f32), hash_w[:H].astype(f32),
                      precision=lax.Precision.HIGHEST) + hash_b[:H].astype(f32)
    proj = proj.reshape(B, L, 2 * H)
    ratio = proj[..., :H] / (proj[..., H:] + eps)                 # (B, L, H)
    ratio = ratio.transpose(0, 2, 1)                              # (B, H, L)
    ratio_row = ratio.reshape(B, H, 1, L)
    ratio_col = ratio.reshape(B, H, L, 1)

    # Transposed per-head activation slab + per-head conv params.
    x_t = xh.transpose(0, 2, 3, 1)                                # (B, H, d_head, L)
    w_t = conv_w.reshape(H, d_head, d_head, K).transpose(0, 3, 1, 2)  # (H,K,co,ci)
    b_t = conv_b.reshape(H, d_head, 1)

    kernel = functools.partial(_lsh_conv_kernel, L=L, d_head=d_head, K=K,
                               pad=pad, rank_tk=rank_tk)
    out_t = pl.pallas_call(
        kernel,
        out_shape=jax.ShapeDtypeStruct((B, H, d_head, L), x.dtype),
        grid=(B, H),
        in_specs=[
            pl.BlockSpec((1, 1, 1, L), lambda b, h: (b, h, 0, 0)),
            pl.BlockSpec((1, 1, L, 1), lambda b, h: (b, h, 0, 0)),
            pl.BlockSpec((1, 1, d_head, L), lambda b, h: (b, h, 0, 0)),
            pl.BlockSpec((1, K, d_head, d_head), lambda b, h: (h, 0, 0, 0)),
            pl.BlockSpec((1, d_head, 1), lambda b, h: (h, 0, 0)),
        ],
        out_specs=pl.BlockSpec((1, 1, d_head, L), lambda b, h: (b, h, 0, 0)),
        compiler_params=pltpu.CompilerParams(
            dimension_semantics=("parallel", "parallel"),
            vmem_limit_bytes=64 * 1024 * 1024),
    )(ratio_row, ratio_col, x_t, w_t, b_t)

    # Layout plumbing back to (B, L, d_model).
    return out_t.transpose(0, 3, 1, 2).reshape(B, L, d_model)


def reference(x, hash_w, hash_b, conv_w, conv_b, n_heads,
              kernel_size=3, padding=1, eps=1e-4):
    """Plain-JAX mirror of the PyTorch LSHConv forward."""
    B, L, d_model = x.shape
    H, K, pad = n_heads, kernel_size, padding
    d_head = d_model // H
    heads = jnp.split(x, H, axis=2)
    proj = jnp.concatenate(
        [jnp.einsum("bld,od->blo", heads[n], hash_w[n],
                    precision=lax.Precision.HIGHEST) + hash_b[n]
         for n in range(H)], axis=2)
    h_x, h_y = proj[..., :H], proj[..., H:2 * H]
    angles = jnp.arctan(h_x / (h_y + eps))
    idx = jnp.argsort(angles, axis=1)                             # stable, (B, L, H)
    xr = x.reshape(B, L, H, d_head)
    gathered = jnp.take_along_axis(xr, idx[..., None], axis=1)    # torch.gather
    g = jnp.swapaxes(gathered.reshape(B, L, d_model), 1, 2)       # (B, d_model, L)
    gp = jnp.concatenate([g[..., L - pad:], g, g[..., :pad]], axis=-1)  # circular
    y = lax.conv_general_dilated(
        gp, conv_w, window_strides=(1,), padding="VALID",
        dimension_numbers=("NCH", "OIH", "NCH"),
        feature_group_count=H, precision=lax.Precision.HIGHEST)
    y = y + conv_b[None, :, None]
    y = jnp.swapaxes(y, 1, 2).reshape(B, L, H, d_head)
    b_ix = jnp.arange(B)[:, None, None]
    h_ix = jnp.arange(H)[None, None, :]
    out = y.at[b_ix, idx, h_ix].set(y)                            # torch.scatter
    return out.reshape(B, L, d_model)


if __name__ == "__main__":
    B, L, d_model, n_heads = 2, 128, 64, 8
    d_head = d_model // n_heads          # module requires d_head >= n_heads
    K, pad = 3, 1                        # LSHConv defaults

    key = jax.random.PRNGKey(0)
    kx, kw, kb = jax.random.split(key, 3)
    x = jax.random.normal(kx, (B, L, d_model), dtype=jnp.float32)

    # WithLSHSort.__init__ builds d_head Linear(d_head, 2) hash layers; the
    # forward only uses the first n_heads of them.
    bound = 1.0 / math.sqrt(d_head)
    hash_w = jax.random.uniform(kw, (d_head, 2, d_head), minval=-bound,
                                maxval=bound, dtype=jnp.float32)
    hash_b = jax.random.uniform(kb, (d_head, 2), minval=-bound, maxval=bound,
                                dtype=jnp.float32)

    # Grouped circular Conv1d(d_model, d_model, K, groups=n_heads) parameters
    # in PyTorch layout (out_ch, in_ch_per_group, K).
    kcw, kcb = jax.random.split(jax.random.PRNGKey(1), 2)
    cbound = 1.0 / math.sqrt(d_head * K)
    conv_w = jax.random.uniform(kcw, (d_model, d_head, K), minval=-cbound,
                                maxval=cbound, dtype=jnp.float32)
    conv_b = jax.random.uniform(kcb, (d_model,), minval=-cbound, maxval=cbound,
                                dtype=jnp.float32)

    out = lsh_conv(x, hash_w, hash_b, conv_w, conv_b, n_heads=n_heads,
                   kernel_size=K, padding=pad)
    out = jax.block_until_ready(out)

    ref = reference(x, hash_w, hash_b, conv_w, conv_b, n_heads,
                    kernel_size=K, padding=pad)
    assert out.shape == x.shape
    assert jnp.allclose(out, ref, atol=1e-4, rtol=1e-4), "kernel != reference"
    print("KERNEL_OK")
</pallas_src>

<mosaic_0001>
module attributes {stable_mosaic.version = 11 : i64} {
  func.func @_lsh_conv_kernel(%arg0: i32, %arg1: i32, %arg2: memref<1x1x1x128xf32, #tpu.memory_space<vmem>>, %arg3: memref<1x1x128x1xf32, #tpu.memory_space<vmem>>, %arg4: memref<1x1x8x128xf32, #tpu.memory_space<vmem>>, %arg5: memref<1x3x8x8xf32, #tpu.memory_space<vmem>>, %arg6: memref<1x8x1xf32, #tpu.memory_space<vmem>>, %arg7: memref<1x1x8x128xf32, #tpu.memory_space<vmem>>) attributes {dimension_semantics = [#tpu.dimension_semantics<parallel>, #tpu.dimension_semantics<parallel>], iteration_bounds = array<i64: 2, 8>, scalar_prefetch = 0 : i64, scratch_operands = 0 : i64, tpu.core_type = #tpu.core_type<tc>, window_params = [{transform_indices = @transform_0, window_bounds = array<i64: 1, 1, 1, 128>}, {transform_indices = @transform_1, window_bounds = array<i64: 1, 1, 128, 1>}, {transform_indices = @transform_2, window_bounds = array<i64: 1, 1, 8, 128>}, {transform_indices = @transform_3, window_bounds = array<i64: 1, 3, 8, 8>}, {transform_indices = @transform_4, window_bounds = array<i64: 1, 8, 1>}, {transform_indices = @transform_5, window_bounds = array<i64: 1, 1, 8, 128>}]} {
    %c0 = arith.constant 0 : index
    %c0_0 = arith.constant 0 : index
    %c0_1 = arith.constant 0 : index
    %c0_2 = arith.constant 0 : index
    %0 = vector.load %arg3[%c0, %c0_0, %c0_1, %c0_2] : memref<1x1x128x1xf32, #tpu.memory_space<vmem>>, vector<1x1x128x1xf32>
    %1 = vector.shape_cast %0 : vector<1x1x128x1xf32> to vector<128x1xf32>
    %c0_3 = arith.constant 0 : index
    %c0_4 = arith.constant 0 : index
    %c0_5 = arith.constant 0 : index
    %c0_6 = arith.constant 0 : index
    %2 = vector.load %arg2[%c0_3, %c0_4, %c0_5, %c0_6] : memref<1x1x1x128xf32, #tpu.memory_space<vmem>>, vector<1x1x1x128xf32>
    %3 = vector.shape_cast %2 : vector<1x1x1x128xf32> to vector<1x128xf32>
    %4 = tpu.iota {dimensions = array<i32: 0>} : vector<128x128xi32>
    %5 = tpu.iota {dimensions = array<i32: 1>} : vector<128x128xi32>
    %6 = vector.broadcast %3 : vector<1x128xf32> to vector<128x128xf32>
    %7 = vector.broadcast %1 : vector<128x1xf32> to vector<128x128xf32>
    %8 = arith.cmpf olt, %6, %7 : vector<128x128xf32>
    %9 = vector.broadcast %3 : vector<1x128xf32> to vector<128x128xf32>
    %10 = vector.broadcast %1 : vector<128x1xf32> to vector<128x128xf32>
    %11 = arith.cmpf oeq, %9, %10 : vector<128x128xf32>
    %12 = arith.cmpi slt, %5, %4 : vector<128x128xi32>
    %13 = arith.andi %11, %12 : vector<128x128xi1>
    %14 = arith.ori %8, %13 : vector<128x128xi1>
    %15 = arith.extui %14 : vector<128x128xi1> to vector<128x128xi32>
    %cst = arith.constant dense<0> : vector<128xi32>
    %16 = vector.multi_reduction <add>, %15, %cst [1] : vector<128x128xi32> to vector<128xi32>
    %17 = vector.shape_cast %16 : vector<128xi32> to vector<128x1xi32>
    %18 = tpu.iota {dimensions = array<i32: 1>} : vector<128x128xi32>
    %19 = vector.broadcast %17 : vector<128x1xi32> to vector<128x128xi32>
    %20 = arith.cmpi eq, %19, %18 : vector<128x128xi32>
    %21 = arith.extui %20 : vector<128x128xi1> to vector<128x128xi32>
    %22 = arith.sitofp %21 : vector<128x128xi32> to vector<128x128xf32>
    %c0_7 = arith.constant 0 : index
    %c0_8 = arith.constant 0 : index
    %c0_9 = arith.constant 0 : index
    %c0_10 = arith.constant 0 : index
    %23 = vector.load %arg4[%c0_7, %c0_8, %c0_9, %c0_10] : memref<1x1x8x128xf32, #tpu.memory_space<vmem>>, vector<1x1x8x128xf32>
    %24 = vector.shape_cast %23 : vector<1x1x8x128xf32> to vector<8x128xf32>
    %cst_11 = arith.constant dense<0.000000e+00> : vector<8x128xf32>
    %25 = tpu.matmul %24, %22, %cst_11 {dimension_numbers = #tpu.dot_dimension_numbers<[1], [0], [0], [1], [0, 0, 1, 1], [], []>} : vector<8x128xf32>, vector<128x128xf32>, vector<8x128xf32> -> vector<8x128xf32>
    %cst_12 = arith.constant 0.000000e+00 : f32
    %26 = vector.broadcast %cst_12 : f32 to vector<8x128xf32>
    %27 = vector.extract_strided_slice %25 {offsets = [0, 127], sizes = [8, 1], strides = [1, 1]} : vector<8x128xf32> to vector<8x1xf32>
    %28 = vector.extract_strided_slice %25 {offsets = [0, 0], sizes = [8, 127], strides = [1, 1]} : vector<8x128xf32> to vector<8x127xf32>
    %29 = tpu.concatenate %27, %28 in 1 : vector<8x1xf32>, vector<8x127xf32> -> vector<8x128xf32>
    %c0_13 = arith.constant 0 : index
    %c0_14 = arith.constant 0 : index
    %c0_15 = arith.constant 0 : index
    %c0_16 = arith.constant 0 : index
    %30 = vector.load %arg5[%c0_13, %c0_14, %c0_15, %c0_16] : memref<1x3x8x8xf32, #tpu.memory_space<vmem>>, vector<1x1x8x8xf32>
    %31 = vector.shape_cast %30 : vector<1x1x8x8xf32> to vector<8x8xf32>
    %cst_17 = arith.constant dense<0.000000e+00> : vector<8x128xf32>
    %32 = tpu.matmul %31, %29, %cst_17 {dimension_numbers = #tpu.dot_dimension_numbers<[1], [0], [0], [1], [0, 0, 1, 1], [], []>} : vector<8x8xf32>, vector<8x128xf32>, vector<8x128xf32> -> vector<8x128xf32>
    %33 = arith.addf %26, %32 : vector<8x128xf32>
    %c0_18 = arith.constant 0 : index
    %c1 = arith.constant 1 : index
    %c0_19 = arith.constant 0 : index
    %c0_20 = arith.constant 0 : index
    %34 = vector.load %arg5[%c0_18, %c1, %c0_19, %c0_20] : memref<1x3x8x8xf32, #tpu.memory_space<vmem>>, vector<1x1x8x8xf32>
    %35 = vector.shape_cast %34 : vector<1x1x8x8xf32> to vector<8x8xf32>
    %cst_21 = arith.constant dense<0.000000e+00> : vector<8x128xf32>
    %36 = tpu.matmul %35, %25, %cst_21 {dimension_numbers = #tpu.dot_dimension_numbers<[1], [0], [0], [1], [0, 0, 1, 1], [], []>} : vector<8x8xf32>, vector<8x128xf32>, vector<8x128xf32> -> vector<8x128xf32>
    %37 = arith.addf %33, %36 : vector<8x128xf32>
    %38 = vector.extract_strided_slice %25 {offsets = [0, 1], sizes = [8, 127], strides = [1, 1]} : vector<8x128xf32> to vector<8x127xf32>
    %39 = vector.extract_strided_slice %25 {offsets = [0, 0], sizes = [8, 1], strides = [1, 1]} : vector<8x128xf32> to vector<8x1xf32>
    %40 = tpu.concatenate %38, %39 in 1 : vector<8x127xf32>, vector<8x1xf32> -> vector<8x128xf32>
    %c0_22 = arith.constant 0 : index
    %c2 = arith.constant 2 : index
    %c0_23 = arith.constant 0 : index
    %c0_24 = arith.constant 0 : index
    %41 = vector.load %arg5[%c0_22, %c2, %c0_23, %c0_24] : memref<1x3x8x8xf32, #tpu.memory_space<vmem>>, vector<1x1x8x8xf32>
    %42 = vector.shape_cast %41 : vector<1x1x8x8xf32> to vector<8x8xf32>
    %cst_25 = arith.constant dense<0.000000e+00> : vector<8x128xf32>
    %43 = tpu.matmul %42, %40, %cst_25 {dimension_numbers = #tpu.dot_dimension_numbers<[1], [0], [0], [1], [0, 0, 1, 1], [], []>} : vector<8x8xf32>, vector<8x128xf32>, vector<8x128xf32> -> vector<8x128xf32>
    %44 = arith.addf %37, %43 : vector<8x128xf32>
    %cst_26 = arith.constant dense<0.000000e+00> : vector<8x128xf32>
    %45 = tpu.matmul %44, %22, %cst_26 {dimension_numbers = #tpu.dot_dimension_numbers<[1], [1], [0], [0], [0, 0, 1, 0], [], []>} : vector<8x128xf32>, vector<128x128xf32>, vector<8x128xf32> -> vector<8x128xf32>
    %c0_27 = arith.constant 0 : index
    %c0_28 = arith.constant 0 : index
    %c0_29 = arith.constant 0 : index
    %46 = vector.load %arg6[%c0_27, %c0_28, %c0_29] : memref<1x8x1xf32, #tpu.memory_space<vmem>>, vector<1x8x1xf32>
    %47 = vector.shape_cast %46 : vector<1x8x1xf32> to vector<8x1xf32>
    %48 = vector.broadcast %47 : vector<8x1xf32> to vector<8x128xf32>
    %49 = arith.addf %45, %48 : vector<8x128xf32>
    %c0_30 = arith.constant 0 : index
    %c0_31 = arith.constant 0 : index
    %c0_32 = arith.constant 0 : index
    %c0_33 = arith.constant 0 : index
    %50 = vector.load %arg7[%c0_30, %c0_31, %c0_32, %c0_33] : memref<1x1x8x128xf32, #tpu.memory_space<vmem>>, vector<1x1x8x128xf32>
    %51 = vector.shape_cast %50 : vector<1x1x8x128xf32> to vector<8x128xf32>
    %52 = vector.shape_cast %49 : vector<8x128xf32> to vector<1x1x8x128xf32>
    tpu.vector_store %arg7[%c0_30, %c0_31, %c0_32, %c0_33], %52 {strides = array<i32>} : memref<1x1x8x128xf32, #tpu.memory_space<vmem>>, vector<1x1x8x128xf32>,
    return
  }
  func.func @transform_0(%arg0: i32, %arg1: i32) -> (i32, i32, i32, i32) {
    %c0_i32 = arith.constant 0 : i32
    %c0_i32_0 = arith.constant 0 : i32
    %c0_i32_1 = arith.constant 0 : i32
    return %arg0, %arg1, %c0_i32, %c0_i32_0 : i32, i32, i32, i32
  }
  func.func @transform_1(%arg0: i32, %arg1: i32) -> (i32, i32, i32, i32) {
    %c0_i32 = arith.constant 0 : i32
    %c0_i32_0 = arith.constant 0 : i32
    %c0_i32_1 = arith.constant 0 : i32
    return %arg0, %arg1, %c0_i32, %c0_i32_0 : i32, i32, i32, i32
  }
  func.func @transform_2(%arg0: i32, %arg1: i32) -> (i32, i32, i32, i32) {
    %c0_i32 = arith.constant 0 : i32
    %c0_i32_0 = arith.constant 0 : i32
    %c0_i32_1 = arith.constant 0 : i32
    return %arg0, %arg1, %c0_i32, %c0_i32_0 : i32, i32, i32, i32
  }
  func.func @transform_3(%arg0: i32, %arg1: i32) -> (i32, i32, i32, i32) {
    %c0_i32 = arith.constant 0 : i32
    %c0_i32_0 = arith.constant 0 : i32
    %c0_i32_1 = arith.constant 0 : i32
    %c0_i32_2 = arith.constant 0 : i32
    return %arg1, %c0_i32, %c0_i32_0, %c0_i32_1 : i32, i32, i32, i32
  }
  func.func @transform_4(%arg0: i32, %arg1: i32) -> (i32, i32, i32) {
    %c0_i32 = arith.constant 0 : i32
    %c0_i32_0 = arith.constant 0 : i32
    %c0_i32_1 = arith.constant 0 : i32
    return %arg1, %c0_i32, %c0_i32_0 : i32, i32, i32
  }
  func.func @transform_5(%arg0: i32, %arg1: i32) -> (i32, i32, i32, i32) {
    %c0_i32 = arith.constant 0 : i32
    %c0_i32_0 = arith.constant 0 : i32
    %c0_i32_1 = arith.constant 0 : i32
    return %arg0, %arg1, %c0_i32, %c0_i32_0 : i32, i32, i32, i32
  }
}

</mosaic_0001>

<bundles_post_ra>
// kernel: tpu_custom_call.1
= control target key start
LH: loop header
LB: loop body
LE: loop exit
PB: predicated region body
PF: predicated region fallthrough
CT: control target
= control target key end

     0   :  { %s2783_s0 = inlined_call_operand.hbm [shape: f32[2,8,1,128], index: 0, kind: input, shape index: {}]   ;;  %s2784_s1 = inlined_call_operand.hbm [shape: f32[2,8,128,1], index: 1, kind: input, shape index: {}]   ;;  %s2785_s2 = inlined_call_operand.hbm [shape: f32[2,8,8,128], index: 2, kind: input, shape index: {}]   ;;  %s2786_s3 = inlined_call_operand.hbm [shape: f32[8,3,8,8], index: 3, kind: input, shape index: {}]   ;;  %s2787_s4 = inlined_call_operand.hbm [shape: f32[8,8,1], index: 4, kind: input, shape index: {}]   ;;  %s2788_s5 = inlined_call_operand.hbm [shape: f32[2,8,8,128], index: 5, kind: output, shape index: {}]  }
   0x1   :  { %2815 = sst [smem:[#allocation28_spill]] %s2784_s1 }
   0x2   :  { %2816 = sst [smem:[#allocation29_spill]] %s2786_s3 }
   0x3   :  { %2817 = sst [smem:[#allocation30_spill]] %s2788_s5 }
   0x4   :  { %10 = vsyncpa [#allocation3], 0 }
   0x5   :  { %12 = vsyncpa [#allocation3 + $0x1], 0 }
   0x6   :  { %13 = vsyncpa [#allocation6], 0 }
   0x7   :  { %15 = vsyncpa [#allocation6 + $0x1], 0 }
   0x8   :  { %16 = vsyncpa [#allocation9], 0 }
   0x9   :  { %18 = vsyncpa [#allocation9 + $0x1], 0 }
   0xa   :  { %19 = vsyncpa [#allocation4], 0 }
   0xb   :  { %21 = vsyncpa [#allocation4 + $0x1], 0  ;;  %s2159_s18 = smov 0   ;;  %s2161_s19 = smov 0  }
   0xc   :  { %s2163_s20 = smov 0   ;;  %s2165_s21 = smov 0  }
   0xd   :  { %s2167_s22 = smov 0   ;;  %s2169_s23 = smov 0  }
   0xe   :  { %s2171_s24 = smov 0   ;;  %s2173_s25 = smov 0  }
   0xf   :  { %s2175_s26 = smov 0   ;;  %s2177_s27 = smov 0  }
  0x10   :  { %s2179_s28 = smov 0  }
  0x11 LB: > { %2818 = sst [smem:[#allocation16_spill]] %s2084_s21  ;;  %s2215_s29 = sadd.s32 4294967295, %s2112_s28   ;;  %s2112_s28 = sphi %s2179_s28, %s27_s28   ;;  %s2108_s27 = sphi %s2177_s27, %s2875_s27   ;;  %s2104_s26 = sphi %s2175_s26, %s2882_s26   ;;  %s2100_s25 = sphi %s2173_s25, %s2873_s25   ;;  %s2096_s24 = sphi %s2171_s24, %s2881_s24   ;;  %s2092_s23 = sphi %s2169_s23, %s2872_s23   ;;  %s2088_s22 = sphi %s2167_s22, %s2880_s22   ;;  %s2084_s21 = sphi %s2165_s21, %s2879_s21   ;;  %s2080_s20 = sphi %s2163_s20, %s2878_s20   ;;  %s2076_s19 = sphi %s2161_s19, %s2877_s19   ;;  %s2072_s18 = sphi %s2159_s18, %s2876_s18  }
  0x12   : > { %2819 = sst [smem:[#allocation17_spill]] %s2092_s23  ;;  %s1440_s30 = sadd.s32 4294967294, %s2112_s28  }
  0x13   : > { %2820 = sst [smem:[#allocation18_spill]] %s2096_s24  ;;  %s36_s6 = sadd.s32 1, %s2104_s26 }
  0x14   : > { %2821 = sst [smem:[#allocation19_spill]] %s2100_s25  ;;  %s39_s7 = sadd.s32 1, %s2108_s27 }
  0x15   : > { %2822 = sst [smem:[#allocation20_spill]] %s2108_s27  ;;  %p37_p0 = scmp.ge.s32.totalorder %s36_s6, 8 }
  0x16   : > { %2823 = sst [smem:[#allocation21_spill]] %s2112_s28  ;;  %s48_s8 = sadd.s32 1, %s2092_s23 }
  0x17   : > { %p55_p1 = scmp.ne.s32.totalorder %s2092_s23, %s2088_s22  ;;  %p2796_p2 = scmp.eq.s32.totalorder %s2112_s28, 0 }
  0x18   : > { %s2884_s6 = smov (%p37_p0, %s36_s6), 0  ;;  %s2886_s7 = smov (!%p37_p0, %s39_s7), %s2108_s27 }
  0x19   : > { %2824 = sst [smem:[#allocation22_spill]] %s2884_s6  ;;  %s2229_s9 = ssub.s32 %s2104_s26, %s2884_s6 }
  0x1a   : > { %p2233_p3 = por %p2796_p2, %p55_p1  ;;  %p41_p4 = scmp.ge.s32.totalorder %s2886_s7, 2 }
  0x1b   : > { %p2797_p5 = scmp.ne.s32.totalorder %s2088_s22, %s2084_s21  ;;  %p195_p6 = scmp.eq.s32.totalorder %s2215_s29, 15 }
  0x1c   : > { %p201_p7 = scmp.eq.s32.totalorder %s1440_s30, 15  ;;  %s2888_s7 = smov (%p41_p4, %s2886_s7), 0 }
  0x1d   : > { %2826 = sst [smem:[#allocation23_spill]] %s2888_s7  ;;  %p2242_p8 = por %p195_p6, %p55_p1 }
  0x1e   : > { %p2249_p9 = por %p201_p7, %p2797_p5  ;;  %s43_s13 = ssub.s32 %s2108_s27, %s2888_s7 }
  0x1f   : > { %s2827_s11 = scalar_select %p2242_p8, 1, 0 }
  0x20   : > { %s2829_s12 = scalar_select %p2249_p9, 1, 0 }
  0x21   : > { %2828 = sst [smem:[#allocation24_spill]] %s2827_s11  ;;  %s45_s14 = sor.u32 %s2229_s9, %s43_s13 }
  0x22   : > { %2830 = sst [smem:[#allocation25_spill]] %s2829_s12  ;;  %p2795_p10 = scmp.lt.s32.totalorder %s2112_s28, 16 }
  0x23   : > { %p46_p11 = scmp.eq.s32.totalorder %s45_s14, 0  ;;  %s2258_s15 = sand.u32 1, %s2092_s23  }
  0x24   : > { %p2264_p12 = pnand %p2795_p10, %p2233_p3  ;;  %s2801_s17 = sand.u32 1, %s2112_s28  }
  0x25   : > { %s2270_s30 = scalar_select %p46_p11, %s2092_s23, %s48_s8  }
  0x26   : > { %s2831_s16 = scalar_select %p2264_p12, 1, 0 }
  0x27   : > { %2832 = sst [smem:[#allocation26_spill]] %s2270_s30  ;;  %s1445_s6 = sshll.u32 %s2258_s15, 7 }
  0x28   : > { %s1446_s7 = sshll.u32 %s2104_s26, 4  ;;  %s1447_s13 = sshll.u32 %s2108_s27, 7 }
  0x29   : > { %s250_s12 = sadd.s32 %s1447_s13, %s1446_s7  ;;  %s244_s5 = scalar_lea.vmem [#allocation5], %s1445_s6 }
  0x2a   : > { %s253_s11 = sshll.u32 %s244_s5, 4  ;;  %s1448_s14 = sshll.u32 %s250_s12, 7  ;;  %s2275_s11 = int_to_ptr.vmem [resolvable:$true] %s253_s11 }
  0x2b   : > { %s2833_s1 = sld [smem:[#allocation28_spill]]  ;;  %s2285_s8 = scalar_lea.sflag [#allocation6], %s2801_s17 }
  0x2c   : > { %p2291_p1 = pneg %p2264_p12 }
  0x31   : > { %s2280_s25 = scalar_lea.hbm %s2833_s1, %s1448_s14  ;;  %s1837_s7 = scalar_lea.hbm %s2833_s1, 32768 }
  0x32   : > { %s1832_s30 = scalar_lea.hbm %s2280_s25, 2048  ;;  %p1838_p6 = scmp.lt.u32.totalorder %s2280_s25, %s2833_s1 }
  0x33   : > { %p1833_p0 = scmp.ne.s32.totalorder %s2280_s25, %s1832_s30  ;;  %p1839_p7 = scmp.lt.u32.totalorder %s1837_s7, %s1832_s30 }
  0x34   : > { %p1841_p10 = scmp.lt.u32.totalorder %s1832_s30, %s2280_s25 }
  0x35   : > { %p1835_p3 = pnand %p2291_p1, %p1833_p0  ;;  %p1840_p11 = por %p1839_p7, %p1838_p6 }
  0x37   : > { %p1836_p4 = pneg %p1835_p3  ;;  %p1842_p2 = por %p1841_p10, %p1840_p11 }
  0x39   : > { %p1843_p5 = pnand %p1842_p2, %p1836_p4 }
  0x3b   : > { %1846 = shalt.err (!%p1843_p5)
}
  0x3c   : > { %s1847_s14 = scalar_lea.vmem %s2275_s11, 2048  ;;  %s2114_s10 = smov [#allocation5]  }
  0x3d   : > { %p1848_p0 = scmp.ne.s32.totalorder %s2275_s11, %s1847_s14  ;;  %s1852_s24 = sshll.u32 %s2114_s10, 4  ;;  %s1853_s24 = int_to_ptr.vmem [resolvable:$false] %s1852_s24 }
  0x3e   : > { %s1854_s6 = scalar_lea.vmem %s1853_s24, 4096  ;;  %p1855_p9 = scmp.lt.s32.totalorder %s2275_s11, %s1853_s24 }
  0x3f   : > { %p1850_p3 = pnand %p1848_p0, %p2291_p1  ;;  %p1856_p8 = scmp.lt.s32.totalorder %s1854_s6, %s1847_s14 }
  0x41   : > { %p1851_p13 = pneg %p1850_p3  ;;  %p1857_p6 = por %p1856_p8, %p1855_p9 }
  0x43   : > { %p1858_p7 = pnand %p1857_p6, %p1851_p13 }
  0x45   : > { %1861 = shalt.err (!%p1858_p7)
}
  0x46   : > { %s2799_s30 = smov 128   ;;  %s2800_s7 = smov 8  }
  0x47   : > { %1717 = dma.hbm_to_vmem [thread:$0]  (!%p2264_p12), %s2280_s25, 2048, %s2275_s11, %s2285_s8, %s2799_s30, %s2799_s30, %s2800_s7  }
  0x48   : > { %p320_p2 = scmp.lt.s32.totalorder %s2112_s28, 17  ;;  %p2835_p5 = scmp.ge.s32.totalorder %s2112_s28, 1 }
  0x49   : > { %p62_p9 = scmp.eq.s32.totalorder %s2215_s29, 0  ;;  %p128_p10 = scmp.eq.s32.totalorder %s2229_s9, 0 }
  0x4a   : > { %p2321_p8 = pnand %p2835_p5, %p320_p2  ;;  %s130_s13 = sadd.s32 1, %s2080_s20 }
  0x4b   : > { %p137_p13 = scmp.ne.s32.totalorder %s2080_s20, %s2076_s19  ;;  %p2837_p4 = scmp.ne.s32.totalorder %s2088_s22, %s2084_s21 }
  0x4c   : > { %s2836_s12 = scalar_select %p2321_p8, 1, 0 }
  0x4d   : > { %p2333_p11 = por %p62_p9, %p2837_p4  ;;  %p143_p0 = scmp.ne.s32.totalorder %s2076_s19, %s2072_s18 }
  0x4e   : > { %s2340_s10 = scalar_select %p128_p10, %s2080_s20, %s130_s13  }
  0x4f   : > { %s2838_s14 = scalar_select %p2333_p11, 1, 0 }
  0x50   : > { %2839 = sst [smem:[#allocation27_spill]] %s2340_s10  ;;  %p2840_p3 = scmp.eq.s32.totalorder %s2112_s28, 0 }
  0x51   : > { %p2344_p7 = por %p143_p0, %p62_p9  ;;  %s2802_s11 = sand.u32 1, %s2080_s20  }
  0x52   : > { %p139_p6 = por %p137_p13, %p2840_p3  ;;  %s1696_s9 = smul.u32 24, %s2802_s11 }
  0x53   : > { %s2841_s25 = scalar_select %p2344_p7, 1, 0 }
  0x54   : > { %p2842_p2 = scmp.lt.s32.totalorder %s2112_s28, 16  ;;  %s1697_s6 = smul.u32 384, %s2104_s26 }
  0x55   : > { %s2844_s3 = sld [smem:[#allocation29_spill]]  ;;  %s287_s7 = scalar_lea.vmem [#allocation8], %s1696_s9 }
  0x56   : > { %p2353_p5 = pnand %p2842_p2, %p139_p6  ;;  %s294_s17 = sshll.u32 %s287_s7, 4  ;;  %s2363_s17 = int_to_ptr.vmem [resolvable:$true] %s294_s17 }
  0x57   : > { %s2845_s11 = sand.u32 1, %s2112_s28  }
  0x58   : > { %s2843_s24 = scalar_select %p2353_p5, 1, 0 }
  0x59   : > { %s2367_s1 = scalar_lea.sflag [#allocation9], %s2845_s11  ;;  %p2812_p10 = pneg %p2353_p5 }
  0x5b   : > { %s2361_s30 = scalar_lea.hbm %s2844_s3, %s1697_s6  ;;  %s1867_s13 = scalar_lea.hbm %s2844_s3, 3072 }
  0x5c   : > { %s1862_s23 = scalar_lea.hbm %s2361_s30, 384  ;;  %p1868_p0 = scmp.lt.u32.totalorder %s2361_s30, %s2844_s3 }
  0x5d   : > { %p1863_p9 = scmp.ne.s32.totalorder %s2361_s30, %s1862_s23  ;;  %p1869_p3 = scmp.lt.u32.totalorder %s1867_s13, %s1862_s23 }
  0x5e   : > { %p1871_p2 = scmp.lt.u32.totalorder %s1862_s23, %s2361_s30 }
  0x5f   : > { %p1865_p13 = pnand %p2812_p10, %p1863_p9  ;;  %p1870_p6 = por %p1869_p3, %p1868_p0 }
  0x61   : > { %p1866_p4 = pneg %p1865_p13  ;;  %p1872_p7 = por %p1871_p2, %p1870_p6 }
  0x63   : > { %p1873_p11 = pnand %p1872_p7, %p1866_p4 }
  0x65   : > { %1876 = shalt.err (!%p1873_p11)
}
  0x66   : > { %s1877_s7 = scalar_lea.vmem %s2363_s17, 384  ;;  %s2117_s11 = smov [#allocation8]  }
  0x67   : > { %p1878_p9 = scmp.ne.s32.totalorder %s2363_s17, %s1877_s7  ;;  %s1882_s6 = sshll.u32 %s2117_s11, 4  ;;  %s1883_s6 = int_to_ptr.vmem [resolvable:$false] %s1882_s6 }
  0x68   : > { %s1884_s10 = scalar_lea.vmem %s1883_s6, 768  ;;  %p1885_p12 = scmp.lt.s32.totalorder %s2363_s17, %s1883_s6 }
  0x69   : > { %p1880_p13 = pnand %p1878_p9, %p2812_p10  ;;  %p1886_p0 = scmp.lt.s32.totalorder %s1884_s10, %s1877_s7 }
  0x6b   : > { %p1881_p8 = pneg %p1880_p13  ;;  %p1887_p3 = por %p1886_p0, %p1885_p12 }
  0x6d   : > { %p1888_p6 = pnand %p1887_p3, %p1881_p8 }
  0x6f   : > { %1891 = shalt.err (!%p1888_p6)
}
  0x70   : > { %s2846_s23 = smov 8   ;;  %s2847_s18 = smov 128  }
  0x71   : > { %1723 = dma.hbm_to_vmem [thread:$0]  (!%p2353_p5), %s2361_s30, 384, %s2363_s17, %s2367_s1, %s2847_s18, %s2847_s18, %s2846_s23  }
  0x72   : > { %s1443_s13 = sshll.u32 %s2108_s27, 3  ;;  %s224_s9 = scalar_lea.vmem [#allocation2], %s2258_s15 }
  0x73   : > { %s233_s7 = sshll.u32 %s224_s9, 4  ;;  %s2401_s11 = sadd.s32 %s2104_s26, %s1443_s13  ;;  %s2403_s7 = int_to_ptr.vmem [resolvable:$true] %s233_s7 }
  0x74   : > { %s1444_s6 = sshll.u32 %s2401_s11, 4  ;;  %s1449_s17 = sshll.u32 %s2258_s15, 3 }
  0x75   : > { %s2410_s28 = scalar_lea.hbm %s2783_s0, %s1444_s6  ;;  %s222_s30 = scalar_lea.sflag [#allocation3], %s2258_s15 }
  0x76   : > { %s1892_s23 = scalar_lea.hbm %s2410_s28, 16  ;;  %s1897_s9 = scalar_lea.hbm %s2783_s0, 256 }
  0x77   : > { %p1893_p12 = scmp.ne.s32.totalorder %s2410_s28, %s1892_s23  ;;  %p1898_p7 = scmp.lt.u32.totalorder %s2410_s28, %s2783_s0 }
  0x78   : > { %p1899_p4 = scmp.lt.u32.totalorder %s1897_s9, %s1892_s23  ;;  %p1901_p9 = scmp.lt.u32.totalorder %s1892_s23, %s2410_s28 }
  0x79   : > { %p1895_p8 = pnand %p1893_p12, %p2291_p1 }
  0x7a   : > { %p1900_p2 = por %p1899_p4, %p1898_p7 }
  0x7b   : > { %p1896_p11 = pneg %p1895_p8 }
  0x7c   : > { %p1902_p13 = por %p1901_p9, %p1900_p2 }
  0x7e   : > { %p1903_p0 = pnand %p1902_p13, %p1896_p11 }
  0x80   : > { %1906 = shalt.err (!%p1903_p0)
}
  0x81   : > { %s1907_s3 = scalar_lea.vmem %s2403_s7, 16  ;;  %s2118_s21 = smov [#allocation2]  }
  0x82   : > { %p1908_p3 = scmp.ne.s32.totalorder %s2403_s7, %s1907_s3  ;;  %s1912_s6 = sshll.u32 %s2118_s21, 4  ;;  %s1913_s6 = int_to_ptr.vmem [resolvable:$false] %s1912_s6 }
  0x83   : > { %s1914_s27 = scalar_lea.vmem %s1913_s6, 32  ;;  %p1915_p8 = scmp.lt.s32.totalorder %s2403_s7, %s1913_s6 }
  0x84   : > { %p1910_p6 = pnand %p1908_p3, %p2291_p1  ;;  %p1916_p10 = scmp.lt.s32.totalorder %s1914_s27, %s1907_s3 }
  0x86   : > { %p1911_p12 = pneg %p1910_p6  ;;  %p1917_p7 = por %p1916_p10, %p1915_p8 }
  0x88   : > { %p1918_p4 = pnand %p1917_p7, %p1911_p12 }
  0x8a   : > { %1921 = shalt.err (!%p1918_p4)
}
  0x8b   : > { %p2848_p11 = scmp.ne.s32.totalorder %s2831_s16, 0  ;;  %s2849_s10 = sshll.u32 %s2401_s11, 7 }
  0x8c   : > { %s2440_s13 = scalar_lea.hbm %s2785_s2, %s2849_s10  ;;  %s267_s9 = scalar_lea.vmem [#allocation7], %s1449_s17 }
  0x8d   : > { %1714 = dma.hbm_to_vmem [thread:$0]  (!%p2848_p11), %s2410_s28, 16, %s2403_s7, %s222_s30  }
  0x8e   : > { %s276_s3 = sshll.u32 %s267_s9, 4  ;;  %s2850_s21 = sand.u32 1, %s2080_s20   ;;  %s277_s3 = int_to_ptr.vmem [resolvable:$true] %s276_s3 }
  0x8f   : > { %s2446_s6 = sshll.u32 %s2850_s21, 3  ;;  %s1922_s27 = scalar_lea.hbm %s2440_s13, 128 }
  0x90   : > { %p1923_p10 = scmp.ne.s32.totalorder %s2440_s13, %s1922_s27  ;;  %s1927_s11 = scalar_lea.hbm %s2785_s2, 2048 }
  0x91   : > { %p1928_p13 = scmp.lt.u32.totalorder %s2440_s13, %s2785_s2  ;;  %p1929_p0 = scmp.lt.u32.totalorder %s1927_s11, %s1922_s27 }
  0x92   : > { %p1925_p2 = pnand %p1923_p10, %p2291_p1  ;;  %p1931_p6 = scmp.lt.u32.totalorder %s1922_s27, %s2440_s13 }
  0x93   : > { %p1930_p3 = por %p1929_p0, %p1928_p13 }
  0x94   : > { %p1926_p9 = pneg %p1925_p2 }
  0x95   : > { %p1932_p12 = por %p1931_p6, %p1930_p3 }
  0x97   : > { %p1933_p8 = pnand %p1932_p12, %p1926_p9 }
  0x99   : > { %1936 = shalt.err (!%p1933_p8)
}
  0x9a   : > { %s1937_s17 = scalar_lea.vmem %s277_s3, 128  ;;  %s2119_s10 = smov [#allocation7]  }
  0x9b   : > { %p1938_p7 = scmp.ne.s32.totalorder %s277_s3, %s1937_s17  ;;  %s1942_s23 = sshll.u32 %s2119_s10, 4  ;;  %s1943_s23 = int_to_ptr.vmem [resolvable:$false] %s1942_s23 }
  0x9c   : > { %s1944_s18 = scalar_lea.vmem %s1943_s23, 256  ;;  %p1945_p2 = scmp.lt.s32.totalorder %s277_s3, %s1943_s23 }
  0x9d   : > { %p1940_p4 = pnand %p1938_p7, %p2291_p1  ;;  %p1946_p5 = scmp.lt.s32.totalorder %s1944_s18, %s1937_s17 }
  0x9f   : > { %p1941_p10 = pneg %p1940_p4  ;;  %p1947_p11 = por %p1946_p5, %p1945_p2 }
  0xa1   : > { %p1948_p0 = pnand %p1947_p11, %p1941_p10 }
  0xa3   : > { %1951 = shalt.err (!%p1948_p0)
}
  0xa4   : > { %p2851_p13 = scmp.ne.s32.totalorder %s2831_s16, 0  ;;  %s1454_s5 = sshll.u32 %s2104_s26, 7 }
  0xa5   : > { %s308_s9 = scalar_lea.vmem [#allocation10], %s2446_s6  ;;  %s313_s7 = scalar_lea.hbm %s2787_s4, %s1454_s5 }
  0xa6   : > { %1720 = dma.hbm_to_vmem [thread:$0]  (!%p2851_p13), %s2440_s13, 128, %s277_s3, %s2285_s8  }
  0xa7   : > { %s315_s21 = sshll.u32 %s308_s9, 4  ;;  %s1952_s11 = scalar_lea.hbm %s313_s7, 128  ;;  %s316_s21 = int_to_ptr.vmem [resolvable:$true] %s315_s21 }
  0xa8   : > { %p1953_p1 = scmp.ne.s32.totalorder %s313_s7, %s1952_s11  ;;  %p2852_p5 = scmp.ne.s32.totalorder %s2843_s24, 0 }
  0xa9   : > { %s1957_s30 = scalar_lea.hbm %s2787_s4, 1024  ;;  %p1958_p6 = scmp.lt.u32.totalorder %s313_s7, %s2787_s4 }
  0xaa   : > { %p2853_p11 = pneg %p2852_p5  ;;  %p1959_p12 = scmp.lt.u32.totalorder %s1957_s30, %s1952_s11 }
  0xab   : > { %p1961_p7 = scmp.lt.u32.totalorder %s1952_s11, %s313_s7 }
  0xac   : > { %p1955_p9 = pnand %p1953_p1, %p2853_p11  ;;  %p1960_p8 = por %p1959_p12, %p1958_p6 }
  0xae   : > { %p1956_p3 = pneg %p1955_p9  ;;  %p1962_p4 = por %p1961_p7, %p1960_p8 }
  0xb0   : > { %p1963_p10 = pnand %p1962_p4, %p1956_p3 }
  0xb2   : > { %1966 = shalt.err (!%p1963_p10)
}
  0xb3   : > { %s1967_s13 = scalar_lea.vmem %s316_s21, 128  ;;  %p2854_p0 = pmov %p2853_p11 }
  0xb4   : > { %p1968_p2 = scmp.ne.s32.totalorder %s316_s21, %s1967_s13  ;;  %s2120_s3 = smov [#allocation10]  }
  0xb5   : > { %s1972_s6 = sshll.u32 %s2120_s3, 4  ;;  %s1973_s6 = int_to_ptr.vmem [resolvable:$false] %s1972_s6 }
  0xb6   : > { %p1970_p13 = pnand %p1968_p2, %p2854_p0  ;;  %s1974_s10 = scalar_lea.vmem %s1973_s6, 256 }
  0xb7   : > { %p1975_p11 = scmp.lt.s32.totalorder %s316_s21, %s1973_s6  ;;  %p1976_p9 = scmp.lt.s32.totalorder %s1974_s10, %s1967_s13 }
  0xb8   : > { %p1971_p1 = pneg %p1970_p13 }
  0xb9   : > { %p1977_p6 = por %p1976_p9, %p1975_p11 }
  0xbb   : > { %p1978_p12 = pnand %p1977_p6, %p1971_p1 }
  0xbd   : > { %1981 = shalt.err (!%p1978_p12)
}
  0xbe   : > { %1726 = dma.hbm_to_vmem [thread:$0]  (!%p2852_p5), %s313_s7, 128, %s316_s21, %s2367_s1  }
  0xbf   : > { %p2855_p3 = scmp.ne.s32.totalorder %s2836_s12, 0 }
  0xc0   : > { %s2489_s23 = sand.u32 (!%p2855_p3), 1, %s2088_s22   ;;  %p2856_p8 = scmp.ne.s32.totalorder (!%p2855_p3), %s2838_s14, 0 }
  0xc1   : > { %324 = sbr.rel (%p2855_p3) target bundleno = 1339 (0x53b), region = 40  ;;  %s327_s18 = scalar_lea.sflag (!%p2855_p3), [#allocation3], %s2489_s23 }
  0xc2   : > { %s329_s5 = scalar_lea.vmem (!%p2855_p3), [#allocation2], %s2489_s23 }
  0xc8   : > { %2055 = dma.done.wait (%p2856_p8), %s327_s18, 16  }
  0xc9   : > { %2057 = vsyncadd (%p2856_p8), %s327_s18, 4294967280  ;;  %s334_s1 = sand.u32 1, %s2215_s29   ;;  %s1456_s24 = sshll.u32 %s2489_s23, 7 }
  0xca   : > { %s335_s12 = scalar_lea.sflag [#allocation6], %s334_s1  ;;  %s2499_s9 = scalar_lea.vmem [#allocation5], %s1456_s24 }
  0xcb   : > { %2059 = dma.done.wait (%p2856_p8), %s335_s12, 2176  }
  0xcc   : > { %2061 = vsyncadd (%p2856_p8), %s335_s12, 4294965120  ;;  %s1457_s21 = sshll.u32 %s2489_s23, 3  ;;  %s354_s27 = sand.u32 1, %s2076_s19  }
  0xcd   : > { %s1698_s28 = smul.u32 24, %s354_s27  ;;  %s2511_s29 = scalar_lea.vmem [#allocation7], %s1457_s21 }
  0xce   : > { %s353_s7 = scalar_lea.sflag [#allocation9], %s334_s1  ;;  %p2857_p5 = scmp.ne.s32.totalorder %s2841_s25, 0 }
  0xcf   : > { %s2513_s11 = scalar_lea.vmem [#allocation8], %s1698_s28 }
  0xd0   : > { %2063 = dma.done.wait (%p2857_p5), %s353_s7, 512  }
  0xd1   : > { %2065 = vsyncadd (%p2857_p5), %s353_s7, 4294966784  ;;  %v2121_v0 = vmov 0   ;;  %v413_v1 = vld [vmem:[%s2499_s9 + $0x10] sm:$0xff]  ;;  %v411_v2 = vld [vmem:[%s2499_s9] sm:$0xff]  ;;  %v428_v17 = vlaneseq  ;;  %s1458_s14 = sshll.u32 %s354_s27, 3  ;;  %s2126_s25 = smov 127  }
  0xd2   : > { %1831 = vset.pattern.permute.xlu1 %v2121_v0  ;;  %1830 = vset.pattern.permute.xlu0 %v2121_v0  ;;  %v414_v3 = vld [vmem:[%s2499_s9 + $0x18] sm:$0xff]  ;;  %v412_v4 = vld [vmem:[%s2499_s9 + $0x8] sm:$0xff]  ;;  %v415_v6 = vld [vmem:[%s2499_s9 + $0x20] sm:$0xff]  ;;  %s2127_s16 = smov 1   ;;  %s365_s15 = scalar_lea.vmem [#allocation10], %s1458_s14 }
  0xd3   : > { %465 = vperm.xlu1 %1831, %v413_v1   ;;  %455 = vperm.xlu0 %1830, %v411_v2   ;;  %v416_v5 = vld [vmem:[%s2499_s9 + $0x28] sm:$0xff]  ;;  %v418_v7 = vld [vmem:[%s2499_s9 + $0x38] sm:$0xff]  ;;  %v417_v8 = vld [vmem:[%s2499_s9 + $0x30] sm:$0xff]  ;;  %v2537_v18 = vshrl.u32 %v428_v17, 7  ;;  %v2540_v20 = vand.u32 127, %v428_v17  ;;  %s2860_s30 = sld [smem:[#allocation19_spill]] }
  0xd4   : > { %v420_v9 = vld [vmem:[%s2499_s9 + $0x48] sm:$0xff]  ;;  %v419_v10 = vld [vmem:[%s2499_s9 + $0x40] sm:$0xff]  ;;  %v422_v11 = vld [vmem:[%s2499_s9 + $0x58] sm:$0xff]  ;;  %s2861_s17 = sld [smem:[#allocation18_spill]]  ;;  %s2862_s8 = sld [smem:[#allocation24_spill]] }
  0xd5   : > { %v421_v12 = vld [vmem:[%s2499_s9 + $0x50] sm:$0xff]  ;;  %v424_v13 = vld [vmem:[%s2499_s9 + $0x68] sm:$0xff]  ;;  %v423_v14 = vld [vmem:[%s2499_s9 + $0x60] sm:$0xff]  ;;  %v431_v19 = vadd.s32 16, %v2537_v18  ;;  %v432_v24 = vadd.s32 24, %v2537_v18  ;;  %vm565_vm2 = vcmp.lt.s32.totalorder %v2540_v20, %v2537_v18  ;;  %v430_v25 = vadd.s32 8, %v2537_v18 }
  0xd6   : > { %v426_v15 = vld [vmem:[%s2499_s9 + $0x78] sm:$0xff]  ;;  %v425_v16 = vld [vmem:[%s2499_s9 + $0x70] sm:$0xff]  ;;  %v433_v28 = vadd.s32 32, %v2537_v18  ;;  %v434_v33 = vadd.s32 40, %v2537_v18  ;;  %v435_v41 = vadd.s32 48, %v2537_v18  ;;  %v436_v48 = vadd.s32 56, %v2537_v18 }
  0xd7   : > { %470 = vperm.xlu1 %1831, %v414_v3   ;;  %460 = vperm.xlu0 %1830, %v412_v4   ;;  %v2544_v21 = vld [vmem:[%s329_s5] ss:$0 sm:$0xff]  ;;  %vm567_vm0 = vcmp.lt.s32.totalorder %v2540_v20, %v431_v19  ;;  %vm568_vm8 = vcmp.lt.s32.totalorder %v2540_v20, %v432_v24  ;;  %vm566_vm11 = vcmp.lt.s32.totalorder %v2540_v20, %v430_v25  ;;  %v437_v54 = vadd.s32 64, %v2537_v18  ;;  %s410_s10 = scalar_lea.vmem [#allocation11], %s1457_s21  ;;  %s2863_s24 = sld [smem:[#allocation30_spill]] }
  0xd8   : > { %v438_v61 = vadd.s32 72, %v2537_v18  ;;  %v442_v30 = vadd.s32 104, %v2537_v18  ;;  %s1266_s18 = sshll.u32 %s410_s10, 4  ;;  %s1251_s27 = scalar_lea.sflag [#allocation4], %s2489_s23  ;;  %s2722_s18 = int_to_ptr.vmem [resolvable:$true] %s1266_s18 }
  0xd9   : > { %s1515_s13 = sshll.u32 %s2860_s30, 3  ;;  %s1982_s28 = scalar_lea.vmem %s2722_s18, 128 }
  0xda   : > { %s1262_s3 = sadd.s32 %s2861_s17, %s1515_s13  ;;  %p1983_p7 = scmp.ne.s32.totalorder %s2722_s18, %s1982_s28 }
  0xdb   : > { %480 = vperm.xlu1 %1831, %v416_v5   ;;  %475 = vperm.xlu0 %1830, %v415_v6   ;;  %v439_v5 = vadd.s32 80, %v2537_v18  ;;  %s1516_s6 = sshll.u32 %s1262_s3, 7  ;;  %p2865_p4 = scmp.ne.s32.totalorder %s2862_s8, 0 }
  0xdc   : > { %s2128_s21 = smov [#allocation11]  }
  0xdd   : > { %s2864_s12 = smov %s2863_s24  ;;  %s2720_s9 = scalar_lea.hbm %s2863_s24, %s1516_s6 }
  0xde   : > { %p1984_p10 = pnand %p1983_p7, %p2865_p4 }
  0xdf   : > { %490 = vperm.xlu1 %1831, %v418_v7   ;;  %485 = vperm.xlu0 %1830, %v417_v8  }
  0xe0   : > { %p1985_p2 = pneg %p1984_p10 }
  0xe3   : > { %500 = vperm.xlu1 %1831, %v420_v9   ;;  %495 = vperm.xlu0 %1830, %v419_v10  }
  0xe7   : > { %510 = vperm.xlu1 %1831, %v422_v11   ;;  %505 = vperm.xlu0 %1830, %v421_v12   ;;  %v440_v12 = vadd.s32 88, %v2537_v18 }
  0xeb   : > { %520 = vperm.xlu1 %1831, %v424_v13   ;;  %515 = vperm.xlu0 %1830, %v423_v14  }
  0xef   : > { %530 = vperm.xlu1 %1831, %v426_v15   ;;  %525 = vperm.xlu0 %1830, %v425_v16  }
 0x152   : > { %v466_v22 = vpop.permute.xlu1 %465  ;;  %v456_v23 = vpop.permute.xlu0 %455 }
 0x153   : > { %vm551_vm1 = vcmp.eq.f32.partialorder %v2544_v21, %v466_v22  ;;  %vm549_vm3 = vcmp.eq.f32.partialorder %v2544_v21, %v456_v23  ;;  %vm533_vm4 = vcmp.lt.f32.partialorder %v2544_v21, %v456_v23  ;;  %vm535_vm5 = vcmp.lt.f32.partialorder %v2544_v21, %v466_v22 }
 0x154   : > { %vm583_vm6 = vmand %vm551_vm1, %vm567_vm0  ;;  %v441_v22 = vadd.s32 96, %v2537_v18 }
 0x155   : > { %vm581_vm7 = vmand %vm549_vm3, %vm565_vm2  ;;  %vm569_vm3 = vcmp.lt.s32.totalorder %v2540_v20, %v433_v28 }
 0x156   : > { %v471_v26 = vpop.permute.xlu1 %470  ;;  %v461_v27 = vpop.permute.xlu0 %460  ;;  %vm597_vm9 = vmor %vm533_vm4, %vm581_vm7 }
 0x157   : > { %vm552_vm10 = vcmp.eq.f32.partialorder %v2544_v21, %v471_v26  ;;  %vm550_vm12 = vcmp.eq.f32.partialorder %v2544_v21, %v461_v27  ;;  %vm599_vm13 = vmor %vm535_vm5, %vm583_vm6  ;;  %vm534_vm14 = vcmp.lt.f32.partialorder %v2544_v21, %v461_v27  ;;  %v613_v29 = vsel %vm597_vm9, 1, %v2121_v0 }
 0x158   : > { %vm2562_vm15 = vmand %vm552_vm10, %vm568_vm8  ;;  %v630_v31 = vshrl.u32 %v613_v29, 16  ;;  %vm536_vm1 = vcmp.lt.f32.partialorder %v2544_v21, %v471_v26  ;;  %v615_v34 = vsel %vm599_vm13, 1, %v2121_v0  ;;  %v629_v36 = vand.u32 65535, %v613_v29 }
 0x159   : > { %vm582_vm0 = vmand %vm550_vm12, %vm566_vm11  ;;  %v654_v40 = vshrl.u32 %v615_v34, 16  ;;  %vm570_vm6 = vcmp.lt.s32.totalorder %v2540_v20, %v434_v33  ;;  %vm571_vm13 = vcmp.lt.s32.totalorder %v2540_v20, %v435_v41  ;;  %v653_v50 = vand.u32 65535, %v615_v34 }
 0x15a   : > { %v476_v32 = vpop.permute.xlu0 %475  ;;  %vm598_vm2 = vmor %vm534_vm14, %vm582_vm0  ;;  %v632_v35 = vcvt.s32.f32 %v630_v31  ;;  %v481_v38 = vpop.permute.xlu1 %480  ;;  %v631_v42 = vcvt.s32.f32 %v629_v36  ;;  %vm572_vm0 = vcmp.lt.s32.totalorder %v2540_v20, %v436_v48  ;;  %v2122_v29 = vmov 0.0|0.0  }
 0x15b   : > { %vm553_vm4 = vcmp.eq.f32.partialorder %v2544_v21, %v476_v32  ;;  %v614_v37 = vsel %vm598_vm2, 1, %v2121_v0  ;;  %vm600_vm5 = vmor %vm536_vm1, %vm2562_vm15  ;;  %vm537_vm7 = vcmp.lt.f32.partialorder %v2544_v21, %v476_v32  ;;  %vm554_vm9 = vcmp.eq.f32.partialorder %v2544_v21, %v481_v38  ;;  %1644 = vmatprep.subr.bf16.mxu0 %v2122_v29  ;;  %1668 = vmatprep.subr.bf16.mxu1 %v2122_v29 }
 0x15c   : > { %v642_v39 = vshrl.u32 %v614_v37, 16  ;;  %635 = vadd.xlane.f32.xlu0 %v632_v35  ;;  %vm585_vm8 = vmand %vm553_vm4, %vm569_vm3  ;;  %v641_v44 = vand.u32 65535, %v614_v37  ;;  %v616_v46 = vsel %vm600_vm5, 1, %v2121_v0  ;;  %v656_v47 = vcvt.s32.f32 %v654_v40 }
 0x15d   : > { %vm601_vm10 = vmor %vm537_vm7, %vm585_vm8  ;;  %vm538_vm11 = vcmp.lt.f32.partialorder %v2544_v21, %v481_v38  ;;  %v666_v51 = vshrl.u32 %v616_v46, 16  ;;  %v665_v55 = vand.u32 65535, %v616_v46  ;;  %v655_v56 = vcvt.s32.f32 %v653_v50 }
 0x15e   : > { %v644_v43 = vcvt.s32.f32 %v642_v39  ;;  %v486_v45 = vpop.permute.xlu0 %485  ;;  %vm586_vm12 = vmand %vm554_vm9, %vm570_vm6  ;;  %v643_v49 = vcvt.s32.f32 %v641_v44  ;;  %v491_v52 = vpop.permute.xlu1 %490  ;;  %v617_v53 = vsel %vm601_vm10, 1, %v2121_v0  ;;  %vm573_vm7 = vcmp.lt.s32.totalorder %v2540_v20, %v437_v54 }
 0x15f   : > { %vm555_vm14 = vcmp.eq.f32.partialorder %v2544_v21, %v486_v45  ;;  %vm602_vm15 = vmor %vm538_vm11, %vm586_vm12  ;;  %vm539_vm1 = vcmp.lt.f32.partialorder %v2544_v21, %v486_v45  ;;  %vm556_vm3 = vcmp.eq.f32.partialorder %v2544_v21, %v491_v52  ;;  %v668_v57 = vcvt.s32.f32 %v666_v51 }
 0x160   : > { %633 = vadd.xlane.f32.xlu0 %v631_v42  ;;  %647 = vadd.xlane.f32.xlu1 %v644_v43  ;;  %vm587_vm2 = vmand %vm555_vm14, %vm571_vm13  ;;  %v678_v58 = vshrl.u32 %v617_v53, 16  ;;  %v618_v60 = vsel %vm602_vm15, 1, %v2121_v0  ;;  %vm540_vm5 = vcmp.lt.f32.partialorder %v2544_v21, %v491_v52  ;;  %v667_v62 = vcvt.s32.f32 %v665_v55 }
 0x161   : > { %vm603_vm4 = vmor %vm539_vm1, %vm587_vm2  ;;  %v690_v1 = vshrl.u32 %v618_v60, 16  ;;  %v677_v2 = vand.u32 65535, %v617_v53  ;;  %vm574_vm10 = vcmp.lt.s32.totalorder %v2540_v20, %v438_v61  ;;  %v689_v6 = vand.u32 65535, %v618_v60 }
 0x162   : > { %v496_v59 = vpop.permute.xlu0 %495  ;;  %vm588_vm6 = vmand %vm556_vm3, %vm572_vm0  ;;  %v680_v63 = vcvt.s32.f32 %v678_v58  ;;  %v501_v3 = vpop.permute.xlu1 %500  ;;  %v619_v4 = vsel %vm603_vm4, 1, %v2121_v0  ;;  %vm575_vm1 = vcmp.lt.s32.totalorder %v2540_v20, %v439_v5  ;;  %vm576_vm4 = vcmp.lt.s32.totalorder %v2540_v20, %v440_v12 }
 0x163   : > { %vm557_vm8 = vcmp.eq.f32.partialorder %v2544_v21, %v496_v59  ;;  %vm604_vm9 = vmor %vm540_vm5, %vm588_vm6  ;;  %vm541_vm11 = vcmp.lt.f32.partialorder %v2544_v21, %v496_v59  ;;  %vm558_vm13 = vcmp.eq.f32.partialorder %v2544_v21, %v501_v3  ;;  %v692_v7 = vcvt.s32.f32 %v690_v1 }
 0x164   : > { %659 = vadd.xlane.f32.xlu1 %v656_v47  ;;  %645 = vadd.xlane.f32.xlu0 %v643_v49  ;;  %vm589_vm12 = vmand %vm557_vm8, %vm573_vm7  ;;  %v679_v8 = vcvt.s32.f32 %v677_v2  ;;  %v702_v9 = vshrl.u32 %v619_v4, 16  ;;  %v620_v11 = vsel %vm604_vm9, 1, %v2121_v0  ;;  %vm542_vm15 = vcmp.lt.f32.partialorder %v2544_v21, %v501_v3 }
 0x165   : > { %vm605_vm14 = vmor %vm541_vm11, %vm589_vm12  ;;  %v691_v13 = vcvt.s32.f32 %v689_v6  ;;  %v714_v16 = vshrl.u32 %v620_v11, 16  ;;  %v701_v17 = vand.u32 65535, %v619_v4  ;;  %v713_v23 = vand.u32 65535, %v620_v11 }
 0x166   : > { %v506_v10 = vpop.permute.xlu0 %505  ;;  %vm590_vm0 = vmand %vm558_vm13, %vm574_vm10  ;;  %v511_v14 = vpop.permute.xlu1 %510  ;;  %v704_v15 = vcvt.s32.f32 %v702_v9  ;;  %v621_v19 = vsel %vm605_vm14, 1, %v2121_v0  ;;  %vm577_vm11 = vcmp.lt.s32.totalorder %v2540_v20, %v441_v22  ;;  %vm578_vm14 = vcmp.lt.s32.totalorder %v2540_v20, %v442_v30 }
 0x167   : > { %vm559_vm2 = vcmp.eq.f32.partialorder %v2544_v21, %v506_v10  ;;  %vm606_vm3 = vmor %vm542_vm15, %vm590_vm0  ;;  %vm560_vm5 = vcmp.eq.f32.partialorder %v2544_v21, %v511_v14  ;;  %vm543_vm6 = vcmp.lt.f32.partialorder %v2544_v21, %v506_v10  ;;  %v716_v24 = vcvt.s32.f32 %v714_v16 }
 0x168   : > { %657 = vadd.xlane.f32.xlu1 %v655_v56  ;;  %671 = vadd.xlane.f32.xlu0 %v668_v57  ;;  %vm591_vm7 = vmand %vm559_vm2, %vm575_vm1  ;;  %v703_v25 = vcvt.s32.f32 %v701_v17  ;;  %v726_v26 = vshrl.u32 %v621_v19, 16  ;;  %v622_v28 = vsel %vm606_vm3, 1, %v2121_v0  ;;  %vm544_vm9 = vcmp.lt.f32.partialorder %v2544_v21, %v511_v14 }
 0x169   : > { %vm607_vm8 = vmor %vm543_vm6, %vm591_vm7  ;;  %v715_v31 = vcvt.s32.f32 %v713_v23  ;;  %v738_v33 = vshrl.u32 %v622_v28, 16  ;;  %v725_v34 = vand.u32 65535, %v621_v19  ;;  %v443_v37 = vadd.s32 112, %v2537_v18 }
 0x16a   : > { %v516_v27 = vpop.permute.xlu0 %515  ;;  %vm592_vm10 = vmand %vm560_vm5, %vm576_vm4  ;;  %v728_v32 = vcvt.s32.f32 %v726_v26  ;;  %v521_v35 = vpop.permute.xlu1 %520  ;;  %v623_v36 = vsel %vm607_vm8, 1, %v2121_v0  ;;  %v737_v38 = vand.u32 65535, %v622_v28  ;;  %v444_v44 = vadd.s32 120, %v2537_v18 }
 0x16b   : > { %vm561_vm12 = vcmp.eq.f32.partialorder %v2544_v21, %v516_v27  ;;  %vm608_vm13 = vmor %vm544_vm9, %vm592_vm10  ;;  %vm545_vm15 = vcmp.lt.f32.partialorder %v2544_v21, %v516_v27  ;;  %vm562_vm1 = vcmp.eq.f32.partialorder %v2544_v21, %v521_v35  ;;  %v740_v39 = vcvt.s32.f32 %v738_v33 }
 0x16c   : > { %669 = vadd.xlane.f32.xlu0 %v667_v62  ;;  %683 = vadd.xlane.f32.xlu1 %v680_v63  ;;  %vm593_vm0 = vmand %vm561_vm12, %vm577_vm11  ;;  %v727_v40 = vcvt.s32.f32 %v725_v34  ;;  %v750_v41 = vshrl.u32 %v623_v36, 16  ;;  %v624_v43 = vsel %vm608_vm13, 1, %v2121_v0  ;;  %vm546_vm3 = vcmp.lt.f32.partialorder %v2544_v21, %v521_v35 }
 0x16d   : > { %vm609_vm2 = vmor %vm545_vm15, %vm593_vm0  ;;  %vm579_vm5 = vcmp.lt.s32.totalorder %v2540_v20, %v443_v37  ;;  %v739_v45 = vcvt.s32.f32 %v737_v38  ;;  %v762_v47 = vshrl.u32 %v624_v43, 16  ;;  %v749_v48 = vand.u32 65535, %v623_v36 }
 0x16e   : > { %v526_v42 = vpop.permute.xlu0 %525  ;;  %vm594_vm4 = vmand %vm562_vm1, %vm578_vm14  ;;  %v752_v46 = vcvt.s32.f32 %v750_v41  ;;  %v531_v49 = vpop.permute.xlu1 %530  ;;  %v625_v50 = vsel %vm609_vm2, 1, %v2121_v0  ;;  %vm580_vm8 = vcmp.lt.s32.totalorder %v2540_v20, %v444_v44  ;;  %v761_v18 = vand.u32 65535, %v624_v43 }
 0x16f   : > { %vm563_vm6 = vcmp.eq.f32.partialorder %v2544_v21, %v526_v42  ;;  %vm610_vm7 = vmor %vm546_vm3, %vm594_vm4  ;;  %vm547_vm9 = vcmp.lt.f32.partialorder %v2544_v21, %v526_v42  ;;  %vm564_vm11 = vcmp.eq.f32.partialorder %v2544_v21, %v531_v49  ;;  %v764_v51 = vcvt.s32.f32 %v762_v47 }
 0x170   : > { %695 = vadd.xlane.f32.xlu0 %v692_v7  ;;  %681 = vadd.xlane.f32.xlu1 %v679_v8  ;;  %vm595_vm10 = vmand %vm563_vm6, %vm579_vm5  ;;  %v751_v52 = vcvt.s32.f32 %v749_v48  ;;  %v774_v53 = vshrl.u32 %v625_v50, 16  ;;  %v626_v54 = vsel %vm610_vm7, 1, %v2121_v0  ;;  %vm548_vm13 = vcmp.lt.f32.partialorder %v2544_v21, %v531_v49 }
 0x171   : > { %vm611_vm12 = vmor %vm547_vm9, %vm595_vm10  ;;  %v763_v55 = vcvt.s32.f32 %v761_v18  ;;  %v786_v57 = vshrl.u32 %v626_v54, 16  ;;  %v773_v58 = vand.u32 65535, %v625_v50  ;;  %v785_v62 = vand.u32 65535, %v626_v54 }
 0x172   : > { %vm596_vm14 = vmand %vm564_vm11, %vm580_vm8  ;;  %v776_v56 = vcvt.s32.f32 %v774_v53  ;;  %v627_v59 = vsel %vm611_vm12, 1, %v2121_v0  ;;  %vm2123_vm0 = vmmov 0   ;;  %v2124_v9 = vmov 0.0  }
 0x173   : > { %vm612_vm15 = vmor %vm548_vm13, %vm596_vm14  ;;  %v788_v60 = vcvt.s32.f32 %v786_v57  ;;  %v775_v61 = vcvt.s32.f32 %v773_v58  ;;  %v798_v63 = vshrl.u32 %v627_v59, 16  ;;  %v787_v2 = vcvt.s32.f32 %v785_v62  ;;  %1591 = vmatprep.mubr.msk.f32.mxu0 %vm2123_vm0, %v2124_v9  ;;  %1641 = vmatprep.mubr.msk.f32.mxu1 %vm2123_vm0, %v2124_v9 }
 0x174   : > { %693 = vadd.xlane.f32.xlu0 %v691_v13  ;;  %707 = vadd.xlane.f32.xlu1 %v704_v15  ;;  %v628_v1 = vsel %vm612_vm15, 1, %v2121_v0  ;;  %v797_v4 = vand.u32 65535, %v627_v59 }
 0x175   : > { %v800_v21 = vcvt.s32.f32 %v798_v63  ;;  %v810_v3 = vshrl.u32 %v628_v1, 16  ;;  %v809_v7 = vand.u32 65535, %v628_v1 }
 0x176   : > { %v799_v6 = vcvt.s32.f32 %v797_v4 }
 0x177   : > { %v812_v5 = vcvt.s32.f32 %v810_v3  ;;  %v811_v8 = vcvt.s32.f32 %v809_v7 }
 0x178   : > { %719 = vadd.xlane.f32.xlu0 %v716_v24  ;;  %705 = vadd.xlane.f32.xlu1 %v703_v25 }
 0x17c   : > { %717 = vadd.xlane.f32.xlu0 %v715_v31  ;;  %731 = vadd.xlane.f32.xlu1 %v728_v32  ;;  %v2125_v32 = vmov 1.0|1.0  }
 0x180   : > { %743 = vadd.xlane.f32.xlu0 %v740_v39  ;;  %729 = vadd.xlane.f32.xlu1 %v727_v40 }
 0x184   : > { %741 = vadd.xlane.f32.xlu0 %v739_v45  ;;  %755 = vadd.xlane.f32.xlu1 %v752_v46 }
 0x188   : > { %767 = vadd.xlane.f32.xlu0 %v764_v51  ;;  %753 = vadd.xlane.f32.xlu1 %v751_v52 }
 0x18c   : > { %765 = vadd.xlane.f32.xlu0 %v763_v55  ;;  %779 = vadd.xlane.f32.xlu1 %v776_v56 }
 0x190   : > { %791 = vadd.xlane.f32.xlu0 %v788_v60  ;;  %777 = vadd.xlane.f32.xlu1 %v775_v61 }
 0x194   : > { %789 = vadd.xlane.f32.xlu0 %v787_v2  ;;  %803 = vadd.xlane.f32.xlu1 %v800_v21 }
 0x198   : > { %815 = vadd.xlane.f32.xlu0 %v812_v5  ;;  %801 = vadd.xlane.f32.xlu1 %v799_v6 }
 0x19c   : > { %813 = vadd.xlane.f32.xlu0 %v811_v8 }
 0x1e9   : > { %v636_v0 = vpop.xlane.xlu0 %635 }
 0x1ea   : > { %v638_v10 = vcvt.f32.s32 %v636_v0 }
 0x1ec   : > { %v639_v15 = vshll.u32 %v638_v10, 16 }
 0x1ed   : > { %v648_v11 = vpop.xlane.xlu1 %647  ;;  %v634_v12 = vpop.xlane.xlu0 %633 }
 0x1ee   : > { %v650_v13 = vcvt.f32.s32 %v648_v11  ;;  %v637_v14 = vcvt.f32.s32 %v634_v12 }
 0x1f0   : > { %v651_v19 = vshll.u32 %v650_v13, 16  ;;  %v640_v22 = vadd.s32 %v639_v15, %v637_v14 }
 0x1f1   : > { %v660_v16 = vpop.xlane.xlu1 %659  ;;  %v646_v17 = vpop.xlane.xlu0 %645 }
 0x1f2   : > { %v649_v23 = vcvt.f32.s32 %v646_v17  ;;  %v662_v24 = vcvt.f32.s32 %v660_v16  ;;  %vm821_vm1 = vcmp.eq.s32.totalorder %v640_v22, %v2540_v20 }
 0x1f4   : > { %v652_v25 = vadd.s32 %v651_v19, %v649_v23  ;;  %v663_v31 = vshll.u32 %v662_v24, 16 }
 0x1f5   : > { %v658_v26 = vpop.xlane.xlu1 %657  ;;  %v672_v27 = vpop.xlane.xlu0 %671 }
 0x1f6   : > { %v661_v28 = vcvt.f32.s32 %v658_v26  ;;  %v674_v30 = vcvt.f32.s32 %v672_v27  ;;  %vm822_vm2 = vcmp.eq.s32.totalorder %v652_v25, %v2540_v20 }
 0x1f7   : > { %vm1645_vm3 = vmpackc.low %vm822_vm2, %vm821_vm1 }
 0x1f8   : > { %1646 = vmatpush3.bf16.msk.msra.mxu0 %vm1645_vm3, %v2125_v32  ;;  %1670 = vmatpush3.bf16.xpose.msk.msra.mxu1 %vm1645_vm3, %v2125_v32  ;;  %v664_v35 = vadd.s32 %v663_v31, %v661_v28  ;;  %v675_v36 = vshll.u32 %v674_v30, 16 }
 0x1f9   : > { %v684_v33 = vpop.xlane.xlu1 %683  ;;  %v670_v34 = vpop.xlane.xlu0 %669  ;;  %1647 = vmatprep.subr.bf16.mxu0 %v2122_v29  ;;  %1671 = vmatprep.subr.bf16.mxu1 %v2122_v29 }
 0x1fa   : > { %v673_v37 = vcvt.f32.s32 %v670_v34  ;;  %v686_v38 = vcvt.f32.s32 %v684_v33  ;;  %vm823_vm4 = vcmp.eq.s32.totalorder %v664_v35, %v2540_v20 }
 0x1fc   : > { %v676_v39 = vadd.s32 %v675_v36, %v673_v37  ;;  %v687_v44 = vshll.u32 %v686_v38, 16 }
 0x1fd   : > { %v682_v40 = vpop.xlane.xlu1 %681  ;;  %v696_v41 = vpop.xlane.xlu0 %695 }
 0x1fe   : > { %v685_v42 = vcvt.f32.s32 %v682_v40  ;;  %v698_v43 = vcvt.f32.s32 %v696_v41  ;;  %vm824_vm5 = vcmp.eq.s32.totalorder %v676_v39, %v2540_v20 }
 0x1ff   : > { %vm1648_vm6 = vmpackc.low %vm824_vm5, %vm823_vm4 }
 0x200   : > { %1649 = vmatpush3.bf16.msk.msra.mxu0 %vm1648_vm6, %v2125_v32  ;;  %1673 = vmatpush3.bf16.xpose.msk.msra.mxu1 %vm1648_vm6, %v2125_v32  ;;  %v688_v47 = vadd.s32 %v687_v44, %v685_v42  ;;  %v699_v48 = vshll.u32 %v698_v43, 16 }
 0x201   : > { %v708_v45 = vpop.xlane.xlu1 %707  ;;  %v694_v46 = vpop.xlane.xlu0 %693  ;;  %1650 = vmatprep.subr.bf16.mxu0 %v2122_v29  ;;  %1674 = vmatprep.subr.bf16.mxu1 %v2122_v29 }
 0x202   : > { %v697_v49 = vcvt.f32.s32 %v694_v46  ;;  %v710_v50 = vcvt.f32.s32 %v708_v45  ;;  %vm825_vm7 = vcmp.eq.s32.totalorder %v688_v47, %v2540_v20 }
 0x204   : > { %v700_v18 = vadd.s32 %v699_v48, %v697_v49  ;;  %v711_v55 = vshll.u32 %v710_v50, 16  ;;  %v869_v50 = vld [vmem:[%s2511_s29] sm:$0xff]  ;;  %s1986_s29 = sshll.u32 %s2128_s21, 4  ;;  %s1987_s29 = int_to_ptr.vmem [resolvable:$false] %s1986_s29 }
 0x205   : > { %v706_v51 = vpop.xlane.xlu1 %705  ;;  %v720_v52 = vpop.xlane.xlu0 %719  ;;  %s1988_s7 = scalar_lea.vmem %s1987_s29, 256  ;;  %p1989_p0 = scmp.lt.s32.totalorder %s2722_s18, %s1987_s29 }
 0x206   : > { %v709_v53 = vcvt.f32.s32 %v706_v51  ;;  %v722_v54 = vcvt.f32.s32 %v720_v52  ;;  %vm826_vm8 = vcmp.eq.s32.totalorder %v700_v18, %v2540_v20  ;;  %v1493_v18 = vld [vmem:[%s2513_s11 + $0x8] sm:$0xff]  ;;  %v944_v51 = vld [vmem:[%s2513_s11] sm:$0xff]  ;;  %p1990_p13 = scmp.lt.s32.totalorder %s1988_s7, %s1982_s28 }
 0x207   : > { %vm1651_vm9 = vmpackc.low %vm826_vm8, %vm825_vm7 }
 0x208   : > { %1652 = vmatpush3.bf16.msk.msra.mxu0 %vm1651_vm9, %v2125_v32  ;;  %1676 = vmatpush3.bf16.xpose.msk.msra.mxu1 %vm1651_vm9, %v2125_v32  ;;  %v712_v58 = vadd.s32 %v711_v55, %v709_v53  ;;  %v723_v59 = vshll.u32 %v722_v54, 16  ;;  %v1496_v54 = vld [vmem:[%s2513_s11 + $0x10] sm:$0xff]  ;;  %p1991_p1 = por %p1990_p13, %p1989_p0 }
 0x209   : > { %v732_v56 = vpop.xlane.xlu1 %731  ;;  %v718_v57 = vpop.xlane.xlu0 %717  ;;  %1653 = vmatprep.subr.bf16.mxu0 %v2122_v29  ;;  %1677 = vmatprep.subr.bf16.mxu1 %v2122_v29 }
 0x20a   : > { %v721_v60 = vcvt.f32.s32 %v718_v57  ;;  %v734_v61 = vcvt.f32.s32 %v732_v56  ;;  %vm827_vm10 = vcmp.eq.s32.totalorder %v712_v58, %v2540_v20  ;;  %p1992_p11 = pnand %p1991_p1, %p1985_p2 }
 0x20c   : > { %v724_v62 = vadd.s32 %v723_v59, %v721_v60  ;;  %v735_v3 = vshll.u32 %v734_v61, 16 }
 0x20d   : > { %v730_v63 = vpop.xlane.xlu1 %729  ;;  %v744_v1 = vpop.xlane.xlu0 %743 }
 0x20e   : > { %v733_v2 = vcvt.f32.s32 %v730_v63  ;;  %v746_v21 = vcvt.f32.s32 %v744_v1  ;;  %vm828_vm11 = vcmp.eq.s32.totalorder %v724_v62, %v2540_v20 }
 0x20f   : > { %vm1654_vm12 = vmpackc.low %vm828_vm11, %vm827_vm10  ;;  %vm947_vm10 = vcmask 64512  }
 0x210   : > { %1655 = vmatpush3.bf16.msk.msra.mxu0 %vm1654_vm12, %v2125_v32  ;;  %1679 = vmatpush3.bf16.xpose.msk.msra.mxu1 %vm1654_vm12, %v2125_v32  ;;  %v736_v6 = vadd.s32 %v735_v3, %v733_v2  ;;  %v747_v7 = vshll.u32 %v746_v21, 16 }
 0x211   : > { %v756_v4 = vpop.xlane.xlu1 %755  ;;  %v742_v5 = vpop.xlane.xlu0 %741  ;;  %1656 = vmatprep.subr.bf16.mxu0 %v2122_v29  ;;  %1680 = vmatprep.subr.bf16.mxu1 %v2122_v29 }
 0x212   : > { %v745_v8 = vcvt.f32.s32 %v742_v5  ;;  %v758_v0 = vcvt.f32.s32 %v756_v4  ;;  %vm829_vm13 = vcmp.eq.s32.totalorder %v736_v6, %v2540_v20 }
 0x214   : > { %v748_v10 = vadd.s32 %v747_v7, %v745_v8  ;;  %v759_v15 = vshll.u32 %v758_v0, 16 }
 0x215   : > { %v754_v11 = vpop.xlane.xlu1 %753  ;;  %v768_v12 = vpop.xlane.xlu0 %767 }
 0x216   : > { %v757_v13 = vcvt.f32.s32 %v754_v11  ;;  %v770_v14 = vcvt.f32.s32 %v768_v12  ;;  %vm830_vm14 = vcmp.eq.s32.totalorder %v748_v10, %v2540_v20 }
 0x217   : > { %vm1657_vm15 = vmpackc.low %vm830_vm14, %vm829_vm13 }
 0x218   : > { %1658 = vmatpush3.bf16.msk.msra.mxu0 %vm1657_vm15, %v2125_v32  ;;  %1682 = vmatpush3.bf16.xpose.msk.msra.mxu1 %vm1657_vm15, %v2125_v32  ;;  %v760_v19 = vadd.s32 %v759_v15, %v757_v13  ;;  %v771_v22 = vshll.u32 %v770_v14, 16 }
 0x219   : > { %v780_v16 = vpop.xlane.xlu1 %779  ;;  %v766_v17 = vpop.xlane.xlu0 %765  ;;  %1659 = vmatprep.subr.bf16.mxu0 %v2122_v29  ;;  %1683 = vmatprep.subr.bf16.mxu1 %v2122_v29 }
 0x21a   : > { %v769_v23 = vcvt.f32.s32 %v766_v17  ;;  %v782_v24 = vcvt.f32.s32 %v780_v16  ;;  %vm831_vm1 = vcmp.eq.s32.totalorder %v760_v19, %v2540_v20 }
 0x21c   : > { %v772_v25 = vadd.s32 %v771_v22, %v769_v23  ;;  %v783_v31 = vshll.u32 %v782_v24, 16 }
 0x21d   : > { %v778_v26 = vpop.xlane.xlu1 %777  ;;  %v792_v27 = vpop.xlane.xlu0 %791 }
 0x21e   : > { %v781_v28 = vcvt.f32.s32 %v778_v26  ;;  %v794_v30 = vcvt.f32.s32 %v792_v27  ;;  %vm832_vm2 = vcmp.eq.s32.totalorder %v772_v25, %v2540_v20 }
 0x21f   : > { %vm1660_vm3 = vmpackc.low %vm832_vm2, %vm831_vm1 }
 0x220   : > { %1661 = vmatpush3.bf16.msk.msra.mxu0 %vm1660_vm3, %v2125_v32  ;;  %1685 = vmatpush3.bf16.xpose.msk.msra.mxu1 %vm1660_vm3, %v2125_v32  ;;  %v784_v35 = vadd.s32 %v783_v31, %v781_v28  ;;  %v795_v36 = vshll.u32 %v794_v30, 16 }
 0x221   : > { %v804_v33 = vpop.xlane.xlu1 %803  ;;  %v790_v34 = vpop.xlane.xlu0 %789  ;;  %1662 = vmatprep.subr.bf16.mxu0 %v2122_v29  ;;  %1686 = vmatprep.subr.bf16.mxu1 %v2122_v29 }
 0x222   : > { %v793_v37 = vcvt.f32.s32 %v790_v34  ;;  %v806_v38 = vcvt.f32.s32 %v804_v33  ;;  %vm833_vm4 = vcmp.eq.s32.totalorder %v784_v35, %v2540_v20 }
 0x224   : > { %v796_v39 = vadd.s32 %v795_v36, %v793_v37  ;;  %v807_v44 = vshll.u32 %v806_v38, 16 }
 0x225   : > { %v802_v40 = vpop.xlane.xlu1 %801  ;;  %v816_v41 = vpop.xlane.xlu0 %815 }
 0x226   : > { %v805_v42 = vcvt.f32.s32 %v802_v40  ;;  %v818_v43 = vcvt.f32.s32 %v816_v41  ;;  %vm834_vm5 = vcmp.eq.s32.totalorder %v796_v39, %v2540_v20 }
 0x227   : > { %vm1663_vm6 = vmpackc.low %vm834_vm5, %vm833_vm4 }
 0x228   : > { %1664 = vmatpush3.bf16.msk.msra.mxu0 %vm1663_vm6, %v2125_v32  ;;  %1688 = vmatpush3.bf16.xpose.msk.msra.mxu1 %vm1663_vm6, %v2125_v32  ;;  %v808_v46 = vadd.s32 %v807_v44, %v805_v42  ;;  %v819_v47 = vshll.u32 %v818_v43, 16 }
 0x229   : > { %v814_v45 = vpop.xlane.xlu0 %813  ;;  %1665 = vmatprep.subr.bf16.mxu0 %v2122_v29  ;;  %1689 = vmatprep.subr.bf16.mxu1 %v2122_v29 }
 0x22a   : > { %v817_v48 = vcvt.f32.s32 %v814_v45  ;;  %vm835_vm7 = vcmp.eq.s32.totalorder %v808_v46, %v2540_v20 }
 0x22c   : > { %v820_v49 = vadd.s32 %v819_v47, %v817_v48 }
 0x22e   : > { %vm836_vm8 = vcmp.eq.s32.totalorder %v820_v49, %v2540_v20 }
 0x22f   : > { %vm1666_vm9 = vmpackc.low %vm836_vm8, %vm835_vm7 }
 0x230   : > { %1667 = vmatpush3.bf16.msk.msra.mxu0 %vm1666_vm9, %v2125_v32  ;;  %1691 = vmatpush3.bf16.xpose.msk.msra.mxu1 %vm1666_vm9, %v2125_v32  ;;  %v1173_v32 = vld [vmem:[%s365_s15] sm:$0xff] }
 0x231   : > { %1594 = vmatprep.subr.mxu0 %v2124_v9 }
 0x233   : > { %1592 = vmatmul.mubr.f32.vlgmr.msra.gmra.mrb[0].mxu0 %v869_v50 }
 0x234   : > { %1596 = vmatprep.mubr.msk.f32.mxu0 %vm2123_vm0, %v2124_v9 }
 0x306   : > { %v936_v29 = vpop.f32.mrb[0].mxu0 }
 0x307   : > { %1094 = vrot.lane.b32.xlu0 %v936_v29, %s2126_s25  ;;  %941 = vrot.lane.b32.xlu1 %v936_v29, %s2127_s16  ;;  %v1593_v20 = vpop.f32.mrb[1].mxu0 }
 0x308   : > { %1595 = vmatpush3.msra.mxu0 %v936_v29 }
 0x309   : > { %1597 = vmatmul.mubr.msk.f32.vlgmr.msra.gmra.mrb[2].mxu0 %vm947_vm10, %v1493_v18  ;;  %1599 = vmatprep.subr.mxu0 %v2124_v9 }
 0x30a   : > { %1601 = vmatprep.mubr.msk.f32.mxu0 %vm2123_vm0, %v2124_v9 }
 0x30b   : > { %1176 = vperm.xlu1 %1831, %v1173_v32  }
 0x379   : > { %v942_v52 = vpop.permute.xlu1 %941  ;;  %v1095_v53 = vpop.permute.xlu0 %1094 }
 0x37a   : > { %1600 = vmatpush3.msra.mxu0 %v942_v52 }
 0x37b   : > { %1602 = vmatmul.mubr.msk.f32.vlgmr.msra.gmra.mrb[2].mxu0 %vm947_vm10, %v944_v51  ;;  %1604 = vmatprep.subr.mxu0 %v2124_v9 }
 0x37c   : > { %1605 = vmatpush3.msra.mxu0 %v1095_v53  ;;  %1606 = vmatprep.mubr.msk.f32.mxu0 %vm2123_vm0, %v2124_v9 }
 0x383   : > { %1607 = vmatmul.mubr.msk.f32.vlgmr.msra.gmra.mrb[2].mxu0 %vm947_vm10, %v1496_v54 }
 0x38a   : > { %v1177_v57 = vpop.permute.xlu1 %1176 }
 0x456   : > { %v1168_v55 = vpop.f32.mrb[2].mxu0 }
 0x457   : > { %v1608_v56 = vpop.f32.mrb[3].mxu0  ;;  %1642 = vmatmul.mubr.f32.vlgmr.msra.gmra.mrb[0].mxu1 %v1168_v55 }
 0x52a   : > { %v1245_v58 = vpop.f32.mrb[0].mxu1 }
 0x52b   : > { %v1246_v59 = vadd.f32 %v1245_v58, %v1177_v57  ;;  %v1643_v60 = vpop.f32.mrb[1].mxu1 }
 0x52d   : > { %1249 = vst [vmem:[%s410_s10] sm:$0xff] %v1246_v59 }
 0x52e   : > { %1995 = shalt.err (!%p1992_p11)
}
 0x52f   : > { %s1996_s23 = scalar_lea.hbm %s2720_s9, 128  ;;  %s2000_s25 = scalar_lea.hbm %s2864_s12, 2048 }
 0x530   : > { %p1997_p9 = scmp.ne.s32.totalorder %s2720_s9, %s1996_s23  ;;  %p2001_p3 = scmp.lt.u32.totalorder %s2720_s9, %s2864_s12 }
 0x531   : > { %p2002_p8 = scmp.lt.u32.totalorder %s2000_s25, %s1996_s23  ;;  %p2004_p7 = scmp.lt.u32.totalorder %s1996_s23, %s2720_s9 }
 0x532   : > { %p1998_p6 = pnand %p1997_p9, %p2865_p4 }
 0x533   : > { %p2003_p5 = por %p2002_p8, %p2001_p3 }
 0x534   : > { %p1999_p12 = pneg %p1998_p6 }
 0x535   : > { %p2005_p10 = por %p2004_p7, %p2003_p5 }
 0x537   : > { %p2006_p2 = pnand %p2005_p10, %p1999_p12 }
 0x539   : > { %2009 = shalt.err (!%p2006_p2)
}
 0x53a   : > { %1709 = dma.vmem_to_hbm [thread:$0]  (%p2865_p4), %s2722_s18, 128, %s2720_s9, %s1251_s27  }
 0x53b PF: > { %s2866_s30 = sld [smem:[#allocation21_spill]]  ;;  %s2867_s17 = sld [smem:[#allocation16_spill]] }
 0x53c   : > { %s2868_s13 = sld [smem:[#allocation25_spill]] }
 0x541   : > { %p1732_p0 = scmp.ge.s32.totalorder %s2866_s30, 2  ;;  %s1278_s3 = sand.u32 1, %s2867_s17  }
 0x542   : > { %p2869_p13 = scmp.ne.s32.totalorder %s2868_s13, 0  ;;  %s1279_s6 = scalar_lea.sflag [#allocation4], %s1278_s3 }
 0x544   : > { %p1728_p1 = pnand %p1732_p0, %p2869_p13 }
 0x546   : > { %2067 = dma.done.wait (!%p1728_p1), %s1279_s6, 128  }
 0x547   : > { %2069 = vsyncadd (!%p1728_p1), %s1279_s6, 4294967168  ;;  %s27_s28 = sadd.s32 1, %s2866_s30   ;;  %s2870_s8 = sld [smem:[#allocation27_spill]] }
 0x548   : > { %p24_p11 = scmp.ge.s32.totalorder %s27_s28, 18   ;;  %s2871_s10 = sld [smem:[#allocation17_spill]] }
 0x549   : > { %s2872_s23 = sld [smem:[#allocation26_spill]]  ;;  %s2873_s25 = sld [smem:[#allocation20_spill]] }
 0x54a   : > { %s2874_s5 = sld [smem:[#allocation22_spill]]  ;;  %s2875_s27 = sld [smem:[#allocation23_spill]] }
 0x54b   : > { %s2876_s18 = smov %s2076_s19  ;;  %s2877_s19 = smov %s2080_s20 }
 0x54c   : > { %s2879_s21 = smov %s2088_s22  ;;  %s2881_s24 = smov %s2104_s26 }
 0x54d   : > { %s2878_s20 = smov %s2870_s8  ;;  %26 = sbr.rel (!%p24_p11) target bundleno = 17 (0x11), region = 135 }
 0x54e   : > { %s2880_s22 = smov %s2871_s10 }
 0x550   : > { %s2882_s26 = smov %s2874_s5 }
 0x554   :  { %1284 = vsyncpa [#allocation3], 1 }
 0x555   :  { %1286 = vsyncpa [#allocation3 + $0x1], 1 }
 0x556   :  { %1287 = vsyncpa [#allocation6], 1 }
 0x557   :  { %1289 = vsyncpa [#allocation6 + $0x1], 1 }
 0x558   :  { %1290 = vsyncpa [#allocation9], 1 }
 0x559   :  { %1292 = vsyncpa [#allocation9 + $0x1], 1 }
 0x55a   :  { %1293 = vsyncpa [#allocation4], 1 }
 0x55b   :  { %1295 = vsyncpa [#allocation4 + $0x1], 1 }

</bundles_post_ra>
